<compile_context>
chip_gen: v7x
topology: tpu7x:2x2x1
jax: 0.10.0
libtpu: 0.0.40
codegen_flags: <defaults>
</compile_context>

<pallas_src>
from functools import partial

import jax
import jax.numpy as jnp
from jax import lax
from jax.experimental import pallas as pl
from jax.experimental.pallas import tpu as pltpu


def _batchnorm_kernel(x_ref, gamma_ref, beta_ref, o_ref, *, eps, inv_n):
    # One (N, TILE_F) column strip resident in VMEM. Rows map to sublanes,
    # features map to lanes; the reduction is per-lane (per feature).
    x = x_ref[...].astype(jnp.float32)                      # (N, TILE_F)

    # Fused one-pass statistics: sum and sum-of-squares in a single sweep.
    s = jnp.sum(x, axis=0, keepdims=True)                   # (1, TILE_F)
    ss = jnp.sum(x * x, axis=0, keepdims=True)              # (1, TILE_F)
    mean = s * inv_n
    var = jnp.maximum(ss * inv_n - mean * mean, 0.0)        # biased variance
    inv_std = lax.rsqrt(var + eps)                          # EUP slot (~free)

    # Fold gamma/beta into one scale/shift -> a single FMA per element.
    gamma = gamma_ref[...]                                  # already f32
    beta = beta_ref[...]
    scale = gamma * inv_std                                 # (1, TILE_F)
    shift = beta - mean * scale                             # (1, TILE_F)

    o_ref[...] = (x * scale + shift).astype(o_ref.dtype)


def _choose_tile_f(n_rows, n_feat, itemsize, vmem_budget_bytes=32 * 1024 * 1024):
    """Lane-dense feature tile that keeps the (N, TILE_F) strips inside VMEM.

    VMEM per grid step ~= 2 (double-buffer) * 2 (x in + out) * N * TILE_F * itemsize.
    """
    if n_feat <= 128:
        # Small feature dim: take the full extent (legal block shape since it
        # equals the array dim). Folding row-groups into lanes would raise
        # lane utilization for tiny F but is not worth it at these sizes.
        return n_feat
    max_tile = max(1, vmem_budget_bytes // (4 * n_rows * itemsize))
    tile_f = (max_tile // 128) * 128
    tile_f = max(128, min(tile_f, 512))
    # Never larger than F rounded up to the next lane multiple.
    tile_f = min(tile_f, ((n_feat + 127) // 128) * 128)
    return tile_f


def batch_norm(x, gamma, beta, eps=1e-5):
    """Forward pass of the PyTorch BatchNorm module (training-mode stats).

    x: (B, S, F) or (N, F); gamma, beta: (F,)
    """
    orig_shape = x.shape
    if x.ndim == 3:
        b, s, f = x.shape
        x2 = x.reshape(b * s, f)
    elif x.ndim == 2:
        x2 = x
    else:
        raise ValueError("expected 2D or 3D input")

    n_rows, n_feat = x2.shape
    itemsize = jnp.dtype(x2.dtype).itemsize

    tile_f = _choose_tile_f(n_rows, n_feat, itemsize)
    grid = (pl.cdiv(n_feat, tile_f),)

    # Cast the tiny affine params to f32 once, outside the per-tile hot path.
    gamma2 = gamma.astype(jnp.float32).reshape(1, n_feat)
    beta2 = beta.astype(jnp.float32).reshape(1, n_feat)

    # Scoped VMEM: x block + out block, each double-buffered, plus headroom.
    # Keep above v5e's 16 MiB default and below ~48 MiB (safe on v7x's 64 MiB).
    block_bytes = n_rows * tile_f * itemsize
    vmem_limit = int(min(48 * 1024 * 1024,
                         max(16 * 1024 * 1024, 4 * block_bytes + (2 << 20))))

    cost = pl.CostEstimate(
        flops=7 * n_rows * n_feat,
        transcendentals=n_feat,                              # rsqrt per feature
        bytes_accessed=2 * n_rows * n_feat * itemsize,       # one read + one write of x
    )

    out = pl.pallas_call(
        partial(_batchnorm_kernel, eps=eps, inv_n=1.0 / n_rows),
        out_shape=jax.ShapeDtypeStruct((n_rows, n_feat), x2.dtype),
        grid=grid,
        in_specs=[
            pl.BlockSpec((n_rows, tile_f), lambda j: (0, j)),
            pl.BlockSpec((1, tile_f), lambda j: (0, j)),     # gamma tile j
            pl.BlockSpec((1, tile_f), lambda j: (0, j)),     # beta tile j
        ],
        out_specs=pl.BlockSpec((n_rows, tile_f), lambda j: (0, j)),
        compiler_params=pltpu.CompilerParams(
            dimension_semantics=("parallel",),               # feature tiles independent
            vmem_limit_bytes=vmem_limit,
        ),
        cost_estimate=cost,
    )(x2, gamma2, beta2)

    return out.reshape(orig_shape)


def _reference(x, gamma, beta, eps=1e-5):
    orig_shape = x.shape
    x2 = x.reshape(-1, x.shape[-1]).astype(jnp.float32)
    mean = jnp.mean(x2, axis=0, keepdims=True)
    var = jnp.mean((x2 - mean) ** 2, axis=0, keepdims=True)
    y = (x2 - mean) / jnp.sqrt(var + eps)
    y = y * gamma[None, :].astype(jnp.float32) + beta[None, :].astype(jnp.float32)
    return y.reshape(orig_shape).astype(x.dtype)


if __name__ == "__main__":
    key = jax.random.PRNGKey(0)
    k1, k2, k3 = jax.random.split(key, 3)

    # Case 1: 3-D input (B, S, F) with num_features = 32 (module's main path).
    batch, seq, feat = 2, 8, 32
    x3d = jax.random.normal(k1, (batch, seq, feat), dtype=jnp.float32)
    gamma = jnp.ones((feat,), dtype=jnp.float32)   # PyTorch default: weight=1
    beta = jnp.zeros((feat,), dtype=jnp.float32)   # PyTorch default: bias=0

    # Case 2: 2-D input (N, F).
    x2d = jax.random.normal(k2, (batch * seq, feat), dtype=jnp.float32)

    # Case 3: lane-dense tiled path (F > 128 -> multiple 128-multiple feature
    # tiles exercised, non-trivial affine params).
    n_big, f_big = 32, 1024
    x_big = jax.random.normal(k3, (n_big, f_big), dtype=jnp.float32)
    gamma_big = 0.5 + jax.random.uniform(k1, (f_big,), dtype=jnp.float32)
    beta_big = jax.random.normal(k2, (f_big,), dtype=jnp.float32)

    out3d = batch_norm(x3d, gamma, beta)
    out2d = batch_norm(x2d, gamma, beta)
    out_big = batch_norm(x_big, gamma_big, beta_big)
    jax.block_until_ready((out3d, out2d, out_big))

    ref3d = _reference(x3d, gamma, beta)
    ref2d = _reference(x2d, gamma, beta)
    ref_big = _reference(x_big, gamma_big, beta_big)

    assert out3d.shape == x3d.shape
    assert out2d.shape == x2d.shape
    assert out_big.shape == x_big.shape
    assert jnp.max(jnp.abs(out3d - ref3d)) < 1e-4
    assert jnp.max(jnp.abs(out2d - ref2d)) < 1e-4
    assert jnp.max(jnp.abs(out_big - ref_big)) < 1e-4

    print("KERNEL_OK")
</pallas_src>

<mosaic_0001>
module attributes {stable_mosaic.version = 11 : i64} {
  func.func @_batchnorm_kernel(%arg0: i32, %arg1: memref<16x32xf32, #tpu.memory_space<vmem>>, %arg2: memref<1x32xf32, #tpu.memory_space<vmem>>, %arg3: memref<1x32xf32, #tpu.memory_space<vmem>>, %arg4: memref<16x32xf32, #tpu.memory_space<vmem>>) attributes {dimension_semantics = [#tpu.dimension_semantics<parallel>], iteration_bounds = array<i64: 1>, scalar_prefetch = 0 : i64, scratch_operands = 0 : i64, tpu.core_type = #tpu.core_type<tc>, window_params = [{transform_indices = @transform_0, window_bounds = array<i64: 16, 32>}, {transform_indices = @transform_1, window_bounds = array<i64: 1, 32>}, {transform_indices = @transform_2, window_bounds = array<i64: 1, 32>}, {transform_indices = @transform_3, window_bounds = array<i64: 16, 32>}]} {
    %c0 = arith.constant 0 : index
    %c0_0 = arith.constant 0 : index
    %0 = vector.load %arg1[%c0, %c0_0] : memref<16x32xf32, #tpu.memory_space<vmem>>, vector<16x32xf32>
    %cst = arith.constant dense<0.000000e+00> : vector<32xf32>
    %1 = vector.multi_reduction <add>, %0, %cst [0] : vector<16x32xf32> to vector<32xf32>
    %2 = vector.shape_cast %1 : vector<32xf32> to vector<1x32xf32>
    %3 = arith.mulf %0, %0 : vector<16x32xf32>
    %cst_1 = arith.constant dense<0.000000e+00> : vector<32xf32>
    %4 = vector.multi_reduction <add>, %3, %cst_1 [0] : vector<16x32xf32> to vector<32xf32>
    %5 = vector.shape_cast %4 : vector<32xf32> to vector<1x32xf32>
    %cst_2 = arith.constant 6.250000e-02 : f32
    %6 = vector.broadcast %cst_2 : f32 to vector<1x32xf32>
    %7 = arith.mulf %2, %6 : vector<1x32xf32>
    %cst_3 = arith.constant 6.250000e-02 : f32
    %8 = vector.broadcast %cst_3 : f32 to vector<1x32xf32>
    %9 = arith.mulf %5, %8 : vector<1x32xf32>
    %10 = arith.mulf %7, %7 : vector<1x32xf32>
    %11 = arith.subf %9, %10 : vector<1x32xf32>
    %cst_4 = arith.constant 0.000000e+00 : f32
    %12 = vector.broadcast %cst_4 : f32 to vector<1x32xf32>
    %13 = arith.maximumf %11, %12 : vector<1x32xf32>
    %cst_5 = arith.constant 9.99999974E-6 : f32
    %14 = vector.broadcast %cst_5 : f32 to vector<1x32xf32>
    %15 = arith.addf %13, %14 : vector<1x32xf32>
    %16 = math.rsqrt %15 : vector<1x32xf32>
    %c0_6 = arith.constant 0 : index
    %c0_7 = arith.constant 0 : index
    %17 = vector.load %arg2[%c0_6, %c0_7] : memref<1x32xf32, #tpu.memory_space<vmem>>, vector<1x32xf32>
    %c0_8 = arith.constant 0 : index
    %c0_9 = arith.constant 0 : index
    %18 = vector.load %arg3[%c0_8, %c0_9] : memref<1x32xf32, #tpu.memory_space<vmem>>, vector<1x32xf32>
    %19 = arith.mulf %17, %16 : vector<1x32xf32>
    %20 = arith.mulf %7, %19 : vector<1x32xf32>
    %21 = arith.subf %18, %20 : vector<1x32xf32>
    %22 = vector.broadcast %19 : vector<1x32xf32> to vector<16x32xf32>
    %23 = arith.mulf %0, %22 : vector<16x32xf32>
    %24 = vector.broadcast %21 : vector<1x32xf32> to vector<16x32xf32>
    %25 = arith.addf %23, %24 : vector<16x32xf32>
    %c0_10 = arith.constant 0 : index
    %c0_11 = arith.constant 0 : index
    %26 = vector.load %arg4[%c0_10, %c0_11] : memref<16x32xf32, #tpu.memory_space<vmem>>, vector<16x32xf32>
    tpu.vector_store %arg4[%c0_10, %c0_11], %25 {strides = array<i32>} : memref<16x32xf32, #tpu.memory_space<vmem>>, vector<16x32xf32>,
    return
  }
  func.func @transform_0(%arg0: i32) -> (i32, i32) {
    %c0_i32 = arith.constant 0 : i32
    %c0_i32_0 = arith.constant 0 : i32
    return %c0_i32, %arg0 : i32, i32
  }
  func.func @transform_1(%arg0: i32) -> (i32, i32) {
    %c0_i32 = arith.constant 0 : i32
    %c0_i32_0 = arith.constant 0 : i32
    return %c0_i32, %arg0 : i32, i32
  }
  func.func @transform_2(%arg0: i32) -> (i32, i32) {
    %c0_i32 = arith.constant 0 : i32
    %c0_i32_0 = arith.constant 0 : i32
    return %c0_i32, %arg0 : i32, i32
  }
  func.func @transform_3(%arg0: i32) -> (i32, i32) {
    %c0_i32 = arith.constant 0 : i32
    %c0_i32_0 = arith.constant 0 : i32
    return %c0_i32, %arg0 : i32, i32
  }
}

</mosaic_0001>

<bundles_post_ra>
// kernel: tpu_custom_call.1
= control target key start
LH: loop header
LB: loop body
LE: loop exit
PB: predicated region body
PF: predicated region fallthrough
CT: control target
= control target key end

     0   :  { %8 = vsyncpa [#allocation3], 0  ;;  %s219_s0 = inlined_call_operand.hbm [shape: f32[16,32], index: 0, kind: input, shape index: {}]   ;;  %s220_s1 = inlined_call_operand.vmem [shape: f32[1,32], index: 1, kind: input, shape index: {}]   ;;  %s221_s2 = inlined_call_operand.vmem [shape: f32[1,32], index: 2, kind: input, shape index: {}]   ;;  %s222_s3 = inlined_call_operand.hbm [shape: f32[16,32], index: 3, kind: output, shape index: {}]  }
   0x1   :  { %9 = vsyncpa [#allocation4], 0  ;;  %s153_s12 = smov [#allocation2]   ;;  %s105_s16 = scalar_lea.hbm %s219_s0, 256 }
   0x2   :  { %s15_s13 = sshll.u32 %s153_s12, 4  ;;  %p106_p0 = scmp.ne.s32.totalorder %s219_s0, %s105_s16  ;;  %s16_s13 = int_to_ptr.vmem [resolvable:$true] %s15_s13 }
   0x3   :  { %p109_p1 = scmp.lt.u32.totalorder %s105_s16, %s219_s0 }
   0x5   :  { %p111_p2 = pnand %p109_p1, %p106_p0 }
   0x7   :  { %114 = shalt.err (!%p111_p2)
}
   0x8   :  { %s115_s21 = scalar_lea.vmem %s16_s13, 256  ;;  %p120_p4 = scmp.lt.s32.totalorder %s16_s13, %s16_s13 }
   0x9   :  { %p116_p3 = scmp.ne.s32.totalorder %s16_s13, %s115_s21  ;;  %p121_p5 = scmp.lt.s32.totalorder %s115_s21, %s115_s21 }
   0xb   :  { %p122_p6 = por %p121_p5, %p120_p4 }
   0xd   :  { %p123_p7 = pnand %p122_p6, %p116_p3 }
   0xf   :  { %126 = shalt.err (!%p123_p7)
}
  0x10   :  { %s154_s22 = smov 128   ;;  %s155_s23 = smov 8  }
  0x11   :  { %21 = dma.hbm_to_vmem [thread:$0]  %s219_s0, 256, %s16_s13, [#allocation3], %s154_s22, %s154_s22, %s155_s23  }
  0x12   :  { %149 = dma.done.wait [#allocation3], 256  }
  0x13   :  { %150 = vsyncadd [#allocation3], 4294967040  ;;  %vm31_vm0 = vcmask 261120   ;;  %v29_v0 = vld [vmem:[#allocation2] sm:$0xff]  ;;  %v30_v1 = vld [vmem:[#allocation2 + $0x8] sm:$0xff]  ;;  %v65_v28 = vlaneseq  ;;  %s156_s29 = smov [#allocation5]  }
  0x14   :  { %v32_v2 = vsel %vm31_vm0, %v29_v0, 0.0  ;;  %v33_v3 = vsel %vm31_vm0, %v30_v1, 0.0  ;;  %v41_v4 = vmul.f32 %v29_v0, %v29_v0  ;;  %v42_v5 = vmul.f32 %v30_v1, %v30_v1  ;;  %v59_v30 = vld [vmem:[%s220_s1] sm:$0x1]  ;;  %s87_s30 = sshll.u32 %s156_s29, 4  ;;  %s88_s30 = int_to_ptr.vmem [resolvable:$true] %s87_s30 }
  0x15   :  { %v34_v6 = vadd.f32 %v33_v3, %v32_v2  ;;  %v66_v29 = vshrl.u32 %v65_v28, 7  ;;  %v60_v34 = vld [vmem:[%s221_s2] sm:$0x1]  ;;  %s127_s1 = scalar_lea.vmem %s88_s30, 256  ;;  %p132_p9 = scmp.lt.s32.totalorder %s88_s30, %s88_s30 }
  0x16   :  { %v43_v7 = vsel %vm31_vm0, %v41_v4, 0.0  ;;  %v44_v8 = vsel %vm31_vm0, %v42_v5, 0.0  ;;  %p128_p8 = scmp.ne.s32.totalorder %s88_s30, %s127_s1  ;;  %p133_p10 = scmp.lt.s32.totalorder %s127_s1, %s127_s1 }
  0x17   :  { %v35_v9 = vrot.slane %v34_v6, 4  ;;  %v45_v10 = vadd.f32 %v44_v8, %v43_v7  ;;  %v67_v31 = vsub.s32 0, %v66_v29 }
  0x18   :  { %p134_p11 = por %p133_p10, %p132_p9 }
  0x19   :  { %v36_v11 = vadd.f32 %v35_v9, %v34_v6  ;;  %v46_v12 = vrot.slane %v45_v10, 4 }
  0x1a   :  { %p135_p12 = pnand %p134_p11, %p128_p8 }
  0x1b   :  { %v37_v13 = vrot.slane %v36_v11, 2  ;;  %v47_v14 = vadd.f32 %v46_v12, %v45_v10 }
  0x1d   :  { %v38_v15 = vadd.f32 %v37_v13, %v36_v11  ;;  %v48_v16 = vrot.slane %v47_v14, 2 }
  0x1f   :  { %v39_v17 = vrot.slane %v38_v15, 1  ;;  %v49_v18 = vadd.f32 %v48_v16, %v47_v14 }
  0x21   :  { %v40_v19 = vadd.f32 %v39_v17, %v38_v15  ;;  %v50_v20 = vrot.slane %v49_v18, 1 }
  0x23   :  { %v51_v21 = vadd.f32 %v50_v20, %v49_v18  ;;  %v52_v22 = vmul.f32 0.0625, %v40_v19 }
  0x25   :  { %v53_v23 = vmul.f32 0.0625, %v51_v21  ;;  %v54_v24 = vmul.f32 %v52_v22, %v52_v22 }
  0x27   :  { %v55_v25 = vsub.f32 %v53_v23, %v54_v24 }
  0x29   :  { %v56_v26 = vmax.f32 %v55_v25, 0.0 }
  0x2b   :  { %v57_v27 = vadd.f32 1e-05, %v56_v26 }
  0x2d   :  { %103 = vrsqrt.f32 %v57_v27 }
  0x37   :  { %v104_v32 = vpop.eup %103 }
  0x38   :  { %v61_v33 = vmul.f32 %v104_v32, %v59_v30 }
  0x3a   :  { %v62_v35 = vmul.f32 %v61_v33, %v52_v22  ;;  %v68_v36 = vrot.slane %v61_v33, %v67_v31 }
  0x3c   :  { %v63_v37 = vsub.f32 %v60_v34, %v62_v35  ;;  %v70_v38 = vmul.f32 %v68_v36, %v29_v0  ;;  %v71_v39 = vmul.f32 %v68_v36, %v30_v1 }
  0x3e   :  { %v76_v40 = vrot.slane %v63_v37, %v67_v31 }
  0x40   :  { %v78_v41 = vadd.f32 %v76_v40, %v70_v38  ;;  %v79_v42 = vadd.f32 %v76_v40, %v71_v39 }
  0x42   :  { %80 = vst.msk [vmem:[#allocation5] sm:$0xff] %vm31_vm0, %v78_v41  ;;  %81 = vst.msk [vmem:[#allocation5 + $0x8] sm:$0xff] %vm31_vm0, %v79_v42 }
  0x43   :  { %138 = shalt.err (!%p135_p12)
}
  0x44   :  { %s139_s5 = scalar_lea.hbm %s222_s3, 256 }
  0x45   :  { %p140_p13 = scmp.ne.s32.totalorder %s222_s3, %s139_s5  ;;  %p143_p0 = scmp.lt.u32.totalorder %s139_s5, %s222_s3 }
  0x47   :  { %p145_p1 = pnand %p143_p0, %p140_p13 }
  0x49   :  { %148 = shalt.err (!%p145_p1)
}
  0x4a   :  { %93 = dma.vmem_to_hbm [thread:$0]  %s88_s30, 256, %s222_s3, [#allocation4], %s154_s22, %s154_s22, %s155_s23  }
  0x4b   :  { %151 = dma.done.wait [#allocation4], 256  }
  0x4c   :  { %152 = vsyncadd [#allocation4], 4294967040 }
  0x4d   :  { %97 = vsyncpa [#allocation3], 1 }
  0x4e   :  { %98 = vsyncpa [#allocation4], 1 }

</bundles_post_ra>
